<compile_context>
chip_gen: v7x
topology: tpu7x:2x2x1
jax: 0.10.0
libtpu: 0.0.40
codegen_flags: <defaults>
</compile_context>

<pallas_src>
import functools

import jax
import jax.numpy as jnp
from jax.experimental import pallas as pl
from jax.experimental.pallas import tpu as pltpu

_LANE = 128
_MAX_TILE = 2048          # node-dim tile cap (fits every generation's VMEM easily)
_XW_RESIDENT_BUDGET = 16 << 20   # keep resident XW (incl. buffering) under this
_FT_VMEM_BUDGET = 24 << 20       # feature-transform per-call VMEM budget


def _round_up(x, m):
    return (x + m - 1) // m * m


def _pick_row_tile(n_pad, cap):
    """Largest multiple of 128 <= cap that divides n_pad (n_pad % 128 == 0)."""
    tm = min(cap, n_pad)
    tm -= tm % _LANE
    tm = max(tm, _LANE)
    while n_pad % tm:
        tm -= _LANE
    return tm


def _pick_ft_tile(n_pad, fin_pad, fo_pad):
    """Row tile for the feature transform keeping its VMEM footprint bounded."""
    w_bytes = 2 * fin_pad * fo_pad * 2                 # double-buffered bf16 W
    per_row = 2 * (fin_pad * 2 + fo_pad * 2 + 4)       # x + out (bf16) + dinv (f32)
    cap = max(_LANE, ((_FT_VMEM_BUDGET - w_bytes) // per_row) // _LANE * _LANE)
    return _pick_row_tile(n_pad, min(cap, _MAX_TILE))


# --------------------------------------------------------------------------
# Kernel 1: feature transform  XW' = dinv * (X @ W)
#   bf16 inputs, f32 MXU accumulate, dinv row-scaling in f32, bf16 output.
# --------------------------------------------------------------------------
def _xw_kernel(x_ref, w_ref, dinv_ref, o_ref):
    o_ref[...] = (
        jnp.dot(x_ref[...], w_ref[...], preferred_element_type=jnp.float32)
        * dinv_ref[...]
    ).astype(o_ref.dtype)


def feature_transform(x_bf16, w_bf16, dinv_col, *, tm):
    n, fin = x_bf16.shape
    fo = w_bf16.shape[1]
    tile_bytes = 2 * (tm * fin * 2 + tm * fo * 2 + tm * 4) + 2 * fin * fo * 2
    vmem_limit = int(max(tile_bytes + (4 << 20), 16 << 20))
    return pl.pallas_call(
        _xw_kernel,
        out_shape=jax.ShapeDtypeStruct((n, fo), jnp.bfloat16),
        grid=(n // tm,),
        in_specs=[
            pl.BlockSpec((tm, fin), lambda i: (i, 0)),
            pl.BlockSpec((fin, fo), lambda i: (0, 0)),
            pl.BlockSpec((tm, 1), lambda i: (i, 0)),
        ],
        out_specs=pl.BlockSpec((tm, fo), lambda i: (i, 0)),
        compiler_params=pltpu.CompilerParams(
            dimension_semantics=("parallel",),
            vmem_limit_bytes=vmem_limit,
        ),
        cost_estimate=pl.CostEstimate(
            flops=2 * n * fin * fo,
            transcendentals=0,
            bytes_accessed=2 * (n * fin + fin * fo + n * fo) + 4 * n,
        ),
    )(x_bf16, w_bf16, dinv_col)


# --------------------------------------------------------------------------
# Kernel 2: tiled aggregation  Y = dinv * (S @ XW') + b  (+ optional relu)
#   grid = (row tiles, k tiles); k (reduction) axis last, f32 VMEM accumulator.
#   S streamed as int8 (exact 0/1/count structure), cast to bf16 for the MXU.
# --------------------------------------------------------------------------
def _aggregate_kernel(adj_ref, xw_ref, dinv_ref, b_ref, o_ref, acc_ref, *,
                      apply_relu, xw_resident, tk):
    k = pl.program_id(1)

    @pl.when(k == 0)
    def _init():
        acc_ref[...] = jnp.zeros_like(acc_ref)

    if xw_resident:
        start = pl.multiple_of(k * tk, _LANE)
        xw = xw_ref[pl.ds(start, tk), :]
    else:
        xw = xw_ref[...]

    acc_ref[...] += jnp.dot(
        adj_ref[...].astype(jnp.bfloat16), xw,
        preferred_element_type=jnp.float32,
    )

    @pl.when(k == pl.num_programs(1) - 1)
    def _finish():
        out = acc_ref[...] * dinv_ref[...] + b_ref[...]
        if apply_relu:
            out = jnp.maximum(out, 0.0)
        o_ref[...] = out.astype(o_ref.dtype)


def aggregate(s_i8, xw_bf16, dinv_col, b_f32, *, tm, tk, apply_relu, out_dtype):
    n = s_i8.shape[0]
    fo = xw_bf16.shape[1]
    n_row_tiles = n // tm
    n_k_tiles = n // tk

    # Keep the whole XW operand resident in VMEM when there are multiple row
    # tiles and it fits the budget (index_map constant -> single DMA).
    xw_resident = n_row_tiles > 1 and (2 * n * fo * 2) <= _XW_RESIDENT_BUDGET
    if xw_resident:
        xw_spec = pl.BlockSpec((n, fo), lambda i, k: (0, 0))
        xw_vmem = 2 * n * fo * 2
    else:
        xw_spec = pl.BlockSpec((tk, fo), lambda i, k: (k, 0))
        xw_vmem = 2 * tk * fo * 2

    out_bytes = jnp.dtype(out_dtype).itemsize
    tile_bytes = (
        2 * tm * tk * 1            # double-buffered int8 adjacency tiles
        + xw_vmem                  # XW operand (resident or double-buffered tile)
        + 2 * tm * fo * out_bytes  # double-buffered output tile
        + tm * fo * 4              # f32 accumulator scratch
        + 2 * (tm + fo) * 4        # dinv + bias blocks
    )
    vmem_limit = int(max(tile_bytes + (4 << 20), 16 << 20))

    kernel = functools.partial(
        _aggregate_kernel, apply_relu=apply_relu, xw_resident=xw_resident, tk=tk)
    return pl.pallas_call(
        kernel,
        out_shape=jax.ShapeDtypeStruct((n, fo), out_dtype),
        grid=(n_row_tiles, n_k_tiles),
        in_specs=[
            pl.BlockSpec((tm, tk), lambda i, k: (i, k)),
            xw_spec,
            pl.BlockSpec((tm, 1), lambda i, k: (i, 0)),
            pl.BlockSpec((1, fo), lambda i, k: (0, 0)),
        ],
        out_specs=pl.BlockSpec((tm, fo), lambda i, k: (i, 0)),
        scratch_shapes=[pltpu.VMEM((tm, fo), jnp.float32)],
        compiler_params=pltpu.CompilerParams(
            dimension_semantics=("parallel", "arbitrary"),
            vmem_limit_bytes=vmem_limit,
        ),
        cost_estimate=pl.CostEstimate(
            flops=2 * n * n * fo,
            transcendentals=0,
            bytes_accessed=(
                n * n                                              # int8 adjacency
                + (n * fo * 2 if xw_resident else n_row_tiles * n * fo * 2)
                + n * fo * out_bytes + n * 4 + fo * 4
            ),
        ),
    )(s_i8, xw_bf16, dinv_col, b_f32)


# --------------------------------------------------------------------------
# One GCN layer on pre-padded inputs.
# --------------------------------------------------------------------------
def gcn_layer(s_i8, x_bf16, dinv_col, w, b, *, tm, tk, apply_relu, out_dtype):
    fin_pad = x_bf16.shape[1]
    fo = w.shape[1]
    fo_pad = _round_up(fo, _LANE)

    w_pad = (
        jnp.zeros((fin_pad, fo_pad), jnp.bfloat16)
        .at[: w.shape[0], :fo].set(w.astype(jnp.bfloat16))
    )
    b_pad = jnp.zeros((1, fo_pad), jnp.float32).at[0, :fo].set(b)

    tm_ft = _pick_ft_tile(x_bf16.shape[0], fin_pad, fo_pad)
    xw = feature_transform(x_bf16, w_pad, dinv_col, tm=tm_ft)
    return aggregate(s_i8, xw, dinv_col, b_pad, tm=tm, tk=tk,
                     apply_relu=apply_relu, out_dtype=out_dtype)


def gcn_structure_and_dinv(edge_index, num_nodes):
    # S = A + I as small-int counts (exact), dinv = D^{-1/2}; matches
    # torch_geometric's gcn_norm with add_self_loops=True and unit edge weights.
    src, dst = edge_index[0], edge_index[1]
    counts = jnp.zeros((num_nodes, num_nodes), jnp.int32).at[dst, src].add(1)
    eye = jnp.eye(num_nodes, dtype=jnp.int32)
    s = jnp.maximum(counts, eye)               # add_remaining_self_loops
    deg = s.sum(axis=1).astype(jnp.float32)
    dinv = jnp.where(deg > 0, jax.lax.rsqrt(deg), 0.0)
    return s.astype(jnp.int8), dinv


def gcn_encoder_forward(params, x, edge_index):
    n, fin = x.shape
    out_ch = params["w2"].shape[1]

    n_pad = _round_up(n, _LANE)
    fin_pad = _round_up(fin, _LANE)
    tm = _pick_row_tile(n_pad, _MAX_TILE)
    tk = tm

    s, dinv = gcn_structure_and_dinv(edge_index, n)
    # Pad in narrow dtypes (no n_pad^2 f32 intermediates).
    s_pad = jnp.pad(s, ((0, n_pad - n), (0, n_pad - n)))
    dinv_col = jnp.pad(dinv, (0, n_pad - n)).reshape(n_pad, 1)
    x_bf16 = jnp.pad(x.astype(jnp.bfloat16), ((0, n_pad - n), (0, fin_pad - fin)))

    middle = gcn_layer(
        s_pad, x_bf16, dinv_col, params["w1"], params["b1"],
        tm=tm, tk=tk, apply_relu=True, out_dtype=jnp.bfloat16,
    )
    output = gcn_layer(
        s_pad, middle, dinv_col, params["w2"], params["b2"],
        tm=tm, tk=tk, apply_relu=False, out_dtype=jnp.float32,
    )
    return output[:n, :out_ch]


def init_params(key, in_channel, out_channel):
    hidden = 2 * out_channel

    def glorot(k, fan_in, fan_out):
        limit = (6.0 / (fan_in + fan_out)) ** 0.5
        return jax.random.uniform(k, (fan_in, fan_out), jnp.float32, -limit, limit)

    k1, k2 = jax.random.split(key)
    return {
        "w1": glorot(k1, in_channel, hidden),   # GCNConv(in, 2*out) weight
        "b1": jnp.zeros((hidden,), jnp.float32),
        "w2": glorot(k2, hidden, out_channel),  # GCNConv(2*out, out) weight
        "b2": jnp.zeros((out_channel,), jnp.float32),
    }


if __name__ == "__main__":
    N, in_channel, out_channel, E = 16, 16, 8, 40
    key = jax.random.PRNGKey(0)
    kx, ke, kp = jax.random.split(key, 3)

    x = jax.random.normal(kx, (N, in_channel), dtype=jnp.float32)
    edge_index = jax.random.randint(ke, (2, E), 0, N, dtype=jnp.int32)
    params = init_params(kp, in_channel, out_channel)

    out = jax.jit(gcn_encoder_forward)(params, x, edge_index)
    out = jax.block_until_ready(out)
    assert out.shape == (N, out_channel)
    assert out.dtype == jnp.float32
    print("KERNEL_OK")
</pallas_src>

<mosaic_0001>
module attributes {stable_mosaic.version = 11 : i64} {
  func.func @_aggregate_kernel(%arg0: i32, %arg1: i32, %arg2: memref<128x128xi8, #tpu.memory_space<vmem>>, %arg3: memref<128x128xbf16, #tpu.memory_space<vmem>>, %arg4: memref<128x1xf32, #tpu.memory_space<vmem>>, %arg5: memref<1x128xf32, #tpu.memory_space<vmem>>, %arg6: memref<128x128xbf16, #tpu.memory_space<vmem>>, %arg7: memref<128x128xf32, #tpu.memory_space<vmem>>) attributes {dimension_semantics = [#tpu.dimension_semantics<parallel>, #tpu.dimension_semantics<arbitrary>], iteration_bounds = array<i64: 1, 1>, scalar_prefetch = 0 : i64, scratch_operands = 1 : i64, tpu.core_type = #tpu.core_type<tc>, window_params = [{transform_indices = @transform_0, window_bounds = array<i64: 128, 128>}, {transform_indices = @transform_1, window_bounds = array<i64: 128, 128>}, {transform_indices = @transform_2, window_bounds = array<i64: 128, 1>}, {pipeline_mode = #tpu.pipeline_mode<synchronous>, transform_indices = @transform_3, window_bounds = array<i64: 1, 128>}, {transform_indices = @transform_4, window_bounds = array<i64: 128, 128>}]} {
    %c0_i32 = arith.constant 0 : i32
    %0 = arith.cmpi eq, %arg1, %c0_i32 : i32
    %1 = arith.extui %0 : i1 to i32
    %c0_i32_0 = arith.constant 0 : i32
    %2 = arith.cmpi ne, %1, %c0_i32_0 : i32
    scf.if %2 {
      %cst_10 = arith.constant 0.000000e+00 : f32
      %13 = vector.broadcast %cst_10 : f32 to vector<128x128xf32>
      %c0_11 = arith.constant 0 : index
      %c0_12 = arith.constant 0 : index
      %14 = vector.load %arg7[%c0_11, %c0_12] : memref<128x128xf32, #tpu.memory_space<vmem>>, vector<128x128xf32>
      tpu.vector_store %arg7[%c0_11, %c0_12], %13 {strides = array<i32>} : memref<128x128xf32, #tpu.memory_space<vmem>>, vector<128x128xf32>,
    } else {
    }
    %c0 = arith.constant 0 : index
    %c0_1 = arith.constant 0 : index
    %3 = vector.load %arg3[%c0, %c0_1] : memref<128x128xbf16, #tpu.memory_space<vmem>>, vector<128x128xbf16>
    %c0_2 = arith.constant 0 : index
    %c0_3 = arith.constant 0 : index
    %4 = vector.load %arg7[%c0_2, %c0_3] : memref<128x128xf32, #tpu.memory_space<vmem>>, vector<128x128xf32>
    %c0_4 = arith.constant 0 : index
    %c0_5 = arith.constant 0 : index
    %5 = vector.load %arg2[%c0_4, %c0_5] : memref<128x128xi8, #tpu.memory_space<vmem>>, vector<128x128xi8>
    %6 = arith.sitofp %5 : vector<128x128xi8> to vector<128x128xbf16>
    %cst = arith.constant dense<0.000000e+00> : vector<128x128xf32>
    %7 = tpu.matmul %6, %3, %cst {dimension_numbers = #tpu.dot_dimension_numbers<[1], [0], [0], [1], [0, 0, 1, 1], [], []>} : vector<128x128xbf16>, vector<128x128xbf16>, vector<128x128xf32> -> vector<128x128xf32>
    %8 = arith.addf %4, %7 : vector<128x128xf32>
    %c0_6 = arith.constant 0 : index
    %c0_7 = arith.constant 0 : index
    %9 = vector.load %arg7[%c0_6, %c0_7] : memref<128x128xf32, #tpu.memory_space<vmem>>, vector<128x128xf32>
    tpu.vector_store %arg7[%c0_6, %c0_7], %8 {strides = array<i32>} : memref<128x128xf32, #tpu.memory_space<vmem>>, vector<128x128xf32>,
    %c0_i32_8 = arith.constant 0 : i32
    %10 = arith.cmpi eq, %arg1, %c0_i32_8 : i32
    %11 = arith.extui %10 : i1 to i32
    %c0_i32_9 = arith.constant 0 : i32
    %12 = arith.cmpi ne, %11, %c0_i32_9 : i32
    scf.if %12 {
      %c0_10 = arith.constant 0 : index
      %c0_11 = arith.constant 0 : index
      %13 = vector.load %arg7[%c0_10, %c0_11] : memref<128x128xf32, #tpu.memory_space<vmem>>, vector<128x128xf32>
      %c0_12 = arith.constant 0 : index
      %c0_13 = arith.constant 0 : index
      %14 = vector.load %arg4[%c0_12, %c0_13] : memref<128x1xf32, #tpu.memory_space<vmem>>, vector<128x1xf32>
      %15 = vector.broadcast %14 : vector<128x1xf32> to vector<128x128xf32>
      %16 = arith.mulf %13, %15 : vector<128x128xf32>
      %c0_14 = arith.constant 0 : index
      %c0_15 = arith.constant 0 : index
      %17 = vector.load %arg5[%c0_14, %c0_15] : memref<1x128xf32, #tpu.memory_space<vmem>>, vector<1x128xf32>
      %18 = vector.broadcast %17 : vector<1x128xf32> to vector<128x128xf32>
      %19 = arith.addf %16, %18 : vector<128x128xf32>
      %cst_16 = arith.constant 0.000000e+00 : f32
      %20 = vector.broadcast %cst_16 : f32 to vector<128x128xf32>
      %21 = arith.maximumf %19, %20 : vector<128x128xf32>
      %22 = arith.truncf %21 : vector<128x128xf32> to vector<128x128xbf16>
      %c0_17 = arith.constant 0 : index
      %c0_18 = arith.constant 0 : index
      %23 = vector.load %arg6[%c0_17, %c0_18] : memref<128x128xbf16, #tpu.memory_space<vmem>>, vector<128x128xbf16>
      tpu.vector_store %arg6[%c0_17, %c0_18], %22 {strides = array<i32>} : memref<128x128xbf16, #tpu.memory_space<vmem>>, vector<128x128xbf16>,
    } else {
    }
    return
  }
  func.func @transform_0(%arg0: i32, %arg1: i32) -> (i32, i32) {
    %c0_i32 = arith.constant 0 : i32
    return %arg0, %arg1 : i32, i32
  }
  func.func @transform_1(%arg0: i32, %arg1: i32) -> (i32, i32) {
    %c0_i32 = arith.constant 0 : i32
    %c0_i32_0 = arith.constant 0 : i32
    return %arg1, %c0_i32 : i32, i32
  }
  func.func @transform_2(%arg0: i32, %arg1: i32) -> (i32, i32) {
    %c0_i32 = arith.constant 0 : i32
    %c0_i32_0 = arith.constant 0 : i32
    return %arg0, %c0_i32 : i32, i32
  }
  func.func @transform_3(%arg0: i32, %arg1: i32) -> (i32, i32) {
    %c0_i32 = arith.constant 0 : i32
    %c0_i32_0 = arith.constant 0 : i32
    %c0_i32_1 = arith.constant 0 : i32
    return %c0_i32, %c0_i32_0 : i32, i32
  }
  func.func @transform_4(%arg0: i32, %arg1: i32) -> (i32, i32) {
    %c0_i32 = arith.constant 0 : i32
    %c0_i32_0 = arith.constant 0 : i32
    return %arg0, %c0_i32 : i32, i32
  }
}

module attributes {stable_mosaic.version = 11 : i64} {
  func.func @_xw_kernel(%arg0: i32, %arg1: memref<128x128xbf16, #tpu.memory_space<vmem>>, %arg2: memref<128x128xbf16, #tpu.memory_space<vmem>>, %arg3: memref<128x1xf32, #tpu.memory_space<vmem>>, %arg4: memref<128x128xbf16, #tpu.memory_space<vmem>>) attributes {dimension_semantics = [#tpu.dimension_semantics<parallel>], iteration_bounds = array<i64: 1>, scalar_prefetch = 0 : i64, scratch_operands = 0 : i64, tpu.core_type = #tpu.core_type<tc>, window_params = [{transform_indices = @transform_0, window_bounds = array<i64: 128, 128>}, {pipeline_mode = #tpu.pipeline_mode<synchronous>, transform_indices = @transform_1, window_bounds = array<i64: 128, 128>}, {transform_indices = @transform_2, window_bounds = array<i64: 128, 1>}, {transform_indices = @transform_3, window_bounds = array<i64: 128, 128>}]} {
    %c0 = arith.constant 0 : index
    %c0_0 = arith.constant 0 : index
    %0 = vector.load %arg1[%c0, %c0_0] : memref<128x128xbf16, #tpu.memory_space<vmem>>, vector<128x128xbf16>
    %c0_1 = arith.constant 0 : index
    %c0_2 = arith.constant 0 : index
    %1 = vector.load %arg2[%c0_1, %c0_2] : memref<128x128xbf16, #tpu.memory_space<vmem>>, vector<128x128xbf16>
    %cst = arith.constant dense<0.000000e+00> : vector<128x128xf32>
    %2 = tpu.matmul %0, %1, %cst {dimension_numbers = #tpu.dot_dimension_numbers<[1], [0], [0], [1], [0, 0, 1, 1], [], []>} : vector<128x128xbf16>, vector<128x128xbf16>, vector<128x128xf32> -> vector<128x128xf32>
    %c0_3 = arith.constant 0 : index
    %c0_4 = arith.constant 0 : index
    %3 = vector.load %arg3[%c0_3, %c0_4] : memref<128x1xf32, #tpu.memory_space<vmem>>, vector<128x1xf32>
    %4 = vector.broadcast %3 : vector<128x1xf32> to vector<128x128xf32>
    %5 = arith.mulf %2, %4 : vector<128x128xf32>
    %6 = arith.truncf %5 : vector<128x128xf32> to vector<128x128xbf16>
    %c0_5 = arith.constant 0 : index
    %c0_6 = arith.constant 0 : index
    %7 = vector.load %arg4[%c0_5, %c0_6] : memref<128x128xbf16, #tpu.memory_space<vmem>>, vector<128x128xbf16>
    tpu.vector_store %arg4[%c0_5, %c0_6], %6 {strides = array<i32>} : memref<128x128xbf16, #tpu.memory_space<vmem>>, vector<128x128xbf16>,
    return
  }
  func.func @transform_0(%arg0: i32) -> (i32, i32) {
    %c0_i32 = arith.constant 0 : i32
    %c0_i32_0 = arith.constant 0 : i32
    return %arg0, %c0_i32 : i32, i32
  }
  func.func @transform_1(%arg0: i32) -> (i32, i32) {
    %c0_i32 = arith.constant 0 : i32
    %c0_i32_0 = arith.constant 0 : i32
    %c0_i32_1 = arith.constant 0 : i32
    return %c0_i32, %c0_i32_0 : i32, i32
  }
  func.func @transform_2(%arg0: i32) -> (i32, i32) {
    %c0_i32 = arith.constant 0 : i32
    %c0_i32_0 = arith.constant 0 : i32
    return %arg0, %c0_i32 : i32, i32
  }
  func.func @transform_3(%arg0: i32) -> (i32, i32) {
    %c0_i32 = arith.constant 0 : i32
    %c0_i32_0 = arith.constant 0 : i32
    return %arg0, %c0_i32 : i32, i32
  }
}

module attributes {stable_mosaic.version = 11 : i64} {
  func.func @_aggregate_kernel(%arg0: i32, %arg1: i32, %arg2: memref<128x128xi8, #tpu.memory_space<vmem>>, %arg3: memref<128x128xbf16, #tpu.memory_space<vmem>>, %arg4: memref<128x1xf32, #tpu.memory_space<vmem>>, %arg5: memref<1x128xf32, #tpu.memory_space<vmem>>, %arg6: memref<128x128xf32, #tpu.memory_space<vmem>>, %arg7: memref<128x128xf32, #tpu.memory_space<vmem>>) attributes {dimension_semantics = [#tpu.dimension_semantics<parallel>, #tpu.dimension_semantics<arbitrary>], iteration_bounds = array<i64: 1, 1>, scalar_prefetch = 0 : i64, scratch_operands = 1 : i64, tpu.core_type = #tpu.core_type<tc>, window_params = [{transform_indices = @transform_0, window_bounds = array<i64: 128, 128>}, {transform_indices = @transform_1, window_bounds = array<i64: 128, 128>}, {transform_indices = @transform_2, window_bounds = array<i64: 128, 1>}, {pipeline_mode = #tpu.pipeline_mode<synchronous>, transform_indices = @transform_3, window_bounds = array<i64: 1, 128>}, {transform_indices = @transform_4, window_bounds = array<i64: 128, 128>}]} {
    %c0_i32 = arith.constant 0 : i32
    %0 = arith.cmpi eq, %arg1, %c0_i32 : i32
    %1 = arith.extui %0 : i1 to i32
    %c0_i32_0 = arith.constant 0 : i32
    %2 = arith.cmpi ne, %1, %c0_i32_0 : i32
    scf.if %2 {
      %cst_10 = arith.constant 0.000000e+00 : f32
      %13 = vector.broadcast %cst_10 : f32 to vector<128x128xf32>
      %c0_11 = arith.constant 0 : index
      %c0_12 = arith.constant 0 : index
      %14 = vector.load %arg7[%c0_11, %c0_12] : memref<128x128xf32, #tpu.memory_space<vmem>>, vector<128x128xf32>
      tpu.vector_store %arg7[%c0_11, %c0_12], %13 {strides = array<i32>} : memref<128x128xf32, #tpu.memory_space<vmem>>, vector<128x128xf32>,
    } else {
    }
    %c0 = arith.constant 0 : index
    %c0_1 = arith.constant 0 : index
    %3 = vector.load %arg3[%c0, %c0_1] : memref<128x128xbf16, #tpu.memory_space<vmem>>, vector<128x128xbf16>
    %c0_2 = arith.constant 0 : index
    %c0_3 = arith.constant 0 : index
    %4 = vector.load %arg7[%c0_2, %c0_3] : memref<128x128xf32, #tpu.memory_space<vmem>>, vector<128x128xf32>
    %c0_4 = arith.constant 0 : index
    %c0_5 = arith.constant 0 : index
    %5 = vector.load %arg2[%c0_4, %c0_5] : memref<128x128xi8, #tpu.memory_space<vmem>>, vector<128x128xi8>
    %6 = arith.sitofp %5 : vector<128x128xi8> to vector<128x128xbf16>
    %cst = arith.constant dense<0.000000e+00> : vector<128x128xf32>
    %7 = tpu.matmul %6, %3, %cst {dimension_numbers = #tpu.dot_dimension_numbers<[1], [0], [0], [1], [0, 0, 1, 1], [], []>} : vector<128x128xbf16>, vector<128x128xbf16>, vector<128x128xf32> -> vector<128x128xf32>
    %8 = arith.addf %4, %7 : vector<128x128xf32>
    %c0_6 = arith.constant 0 : index
    %c0_7 = arith.constant 0 : index
    %9 = vector.load %arg7[%c0_6, %c0_7] : memref<128x128xf32, #tpu.memory_space<vmem>>, vector<128x128xf32>
    tpu.vector_store %arg7[%c0_6, %c0_7], %8 {strides = array<i32>} : memref<128x128xf32, #tpu.memory_space<vmem>>, vector<128x128xf32>,
    %c0_i32_8 = arith.constant 0 : i32
    %10 = arith.cmpi eq, %arg1, %c0_i32_8 : i32
    %11 = arith.extui %10 : i1 to i32
    %c0_i32_9 = arith.constant 0 : i32
    %12 = arith.cmpi ne, %11, %c0_i32_9 : i32
    scf.if %12 {
      %c0_10 = arith.constant 0 : index
      %c0_11 = arith.constant 0 : index
      %13 = vector.load %arg7[%c0_10, %c0_11] : memref<128x128xf32, #tpu.memory_space<vmem>>, vector<128x128xf32>
      %c0_12 = arith.constant 0 : index
      %c0_13 = arith.constant 0 : index
      %14 = vector.load %arg4[%c0_12, %c0_13] : memref<128x1xf32, #tpu.memory_space<vmem>>, vector<128x1xf32>
      %15 = vector.broadcast %14 : vector<128x1xf32> to vector<128x128xf32>
      %16 = arith.mulf %13, %15 : vector<128x128xf32>
      %c0_14 = arith.constant 0 : index
      %c0_15 = arith.constant 0 : index
      %17 = vector.load %arg5[%c0_14, %c0_15] : memref<1x128xf32, #tpu.memory_space<vmem>>, vector<1x128xf32>
      %18 = vector.broadcast %17 : vector<1x128xf32> to vector<128x128xf32>
      %19 = arith.addf %16, %18 : vector<128x128xf32>
      %c0_16 = arith.constant 0 : index
      %c0_17 = arith.constant 0 : index
      %20 = vector.load %arg6[%c0_16, %c0_17] : memref<128x128xf32, #tpu.memory_space<vmem>>, vector<128x128xf32>
      tpu.vector_store %arg6[%c0_16, %c0_17], %19 {strides = array<i32>} : memref<128x128xf32, #tpu.memory_space<vmem>>, vector<128x128xf32>,
    } else {
    }
    return
  }
  func.func @transform_0(%arg0: i32, %arg1: i32) -> (i32, i32) {
    %c0_i32 = arith.constant 0 : i32
    return %arg0, %arg1 : i32, i32
  }
  func.func @transform_1(%arg0: i32, %arg1: i32) -> (i32, i32) {
    %c0_i32 = arith.constant 0 : i32
    %c0_i32_0 = arith.constant 0 : i32
    return %arg1, %c0_i32 : i32, i32
  }
  func.func @transform_2(%arg0: i32, %arg1: i32) -> (i32, i32) {
    %c0_i32 = arith.constant 0 : i32
    %c0_i32_0 = arith.constant 0 : i32
    return %arg0, %c0_i32 : i32, i32
  }
  func.func @transform_3(%arg0: i32, %arg1: i32) -> (i32, i32) {
    %c0_i32 = arith.constant 0 : i32
    %c0_i32_0 = arith.constant 0 : i32
    %c0_i32_1 = arith.constant 0 : i32
    return %c0_i32, %c0_i32_0 : i32, i32
  }
  func.func @transform_4(%arg0: i32, %arg1: i32) -> (i32, i32) {
    %c0_i32 = arith.constant 0 : i32
    %c0_i32_0 = arith.constant 0 : i32
    return %arg0, %c0_i32 : i32, i32
  }
}

</mosaic_0001>

<bundles_post_ra>
// kernel: gcn_encoder_forward.5
= control target key start
LH: loop header
LB: loop body
LE: loop exit
PB: predicated region body
PF: predicated region fallthrough
CT: control target
= control target key end

     0   :  { %v676_v1 = vmov 0   ;;  %s848_s1 = inlined_call_operand.vmem [shape: bf16[128,128], index: 1, kind: input, shape index: {}]   ;;  %s849_s0 = inlined_call_operand.vmem [shape: s8[128,128], index: 0, kind: input, shape index: {}]   ;;  %s850_s2 = inlined_call_operand.vmem [shape: f32[128,1], index: 2, kind: input, shape index: {}]   ;;  %s851_s3 = inlined_call_operand.vmem [shape: f32[1,128], index: 3, kind: input, shape index: {}]   ;;  %s852_s4 = inlined_call_operand.vmem [shape: bf16[128,128], index: 4, kind: output, shape index: {}]  }
   0x1   :  { %v668_v0 = vld [vmem:[%s848_s1] sm:$0xff]   ;;  %667 = vset.pattern.permute.xlu1 %v676_v1  ;;  %666 = vset.pattern.permute.xlu0 %v676_v1  ;;  %v669_v2 = vld [vmem:[%s848_s1 + $0x8] sm:$0xff]   ;;  %v670_v3 = vld [vmem:[%s848_s1 + $0x10] sm:$0xff]  }
   0x2   :  { %617 = vmatprep.subr.bf16.mxu0 %v668_v0  ;;  %649 = vmatprep.subr.bf16.mxu1 %v668_v0  ;;  %v671_v4 = vld [vmem:[%s848_s1 + $0x18] sm:$0xff]   ;;  %v717_v5 = vld [vmem:[%s849_s0] sm:$0xff]  ;;  %v722_v6 = vld [vmem:[%s849_s0 + $0x10] sm:$0xff] }
   0x3   :  { %618 = vmatpush3.bf16.msra.mxu0 %v668_v0  ;;  %657 = vmatpush3.bf16.msra.mxu1 %v668_v0  ;;  %v74_v7 = vunpack.c.l.s8.bf16 %v717_v5  ;;  %v78_v8 = vunpack.c.l.s8.bf16 %v722_v6  ;;  %v280_v9 = vld [vmem:[%s850_s2 + $0x10] sm:$0xff]  ;;  %v278_v10 = vld [vmem:[%s850_s2] sm:$0xff]  ;;  %v281_v11 = vld [vmem:[%s850_s2 + $0x18] sm:$0xff]  ;;  %v75_v27 = vunpack.c.h.s8.bf16 %v717_v5  ;;  %v79_v28 = vunpack.c.h.s8.bf16 %v722_v6 }
   0x4   :  { %619 = vmatprep.subr.bf16.mxu0 %v669_v2  ;;  %650 = vmatprep.subr.bf16.mxu1 %v669_v2  ;;  %v279_v12 = vld [vmem:[%s850_s2 + $0x8] sm:$0xff]  ;;  %v672_v13 = vld [vmem:[%s848_s1 + $0x20] sm:$0xff]   ;;  %v285_v17 = vld [vmem:[%s850_s2 + $0x38] sm:$0xff] }
   0x5   :  { %306 = vperm.xlu1 %667, %v280_v9   ;;  %296 = vperm.xlu0 %666, %v278_v10   ;;  %v283_v14 = vld [vmem:[%s850_s2 + $0x28] sm:$0xff]  ;;  %v282_v15 = vld [vmem:[%s850_s2 + $0x20] sm:$0xff]  ;;  %v284_v18 = vld [vmem:[%s850_s2 + $0x30] sm:$0xff] }
   0x6   :  { %633 = vmatprep.mubr.bf16.mxu0 %v74_v7  ;;  %641 = vmatprep.mubr.bf16.mxu1 %v78_v8  ;;  %v673_v16 = vld [vmem:[%s848_s1 + $0x28] sm:$0xff]   ;;  %v674_v19 = vld [vmem:[%s848_s1 + $0x30] sm:$0xff]   ;;  %v286_v21 = vld [vmem:[%s850_s2 + $0x40] sm:$0xff] }
   0x7   :  { %620 = vmatpush3.bf16.msra.mxu0 %v669_v2  ;;  %658 = vmatpush3.bf16.msra.mxu1 %v669_v2  ;;  %v287_v20 = vld [vmem:[%s850_s2 + $0x48] sm:$0xff]  ;;  %v675_v22 = vld [vmem:[%s848_s1 + $0x38] sm:$0xff]   ;;  %v288_v24 = vld [vmem:[%s850_s2 + $0x50] sm:$0xff] }
   0x8   :  { %621 = vmatprep.subr.bf16.mxu0 %v670_v3  ;;  %651 = vmatprep.subr.bf16.mxu1 %v670_v3  ;;  %v289_v23 = vld [vmem:[%s850_s2 + $0x58] sm:$0xff]  ;;  %v71_v25 = vld [vmem:[%s849_s0 + $0x8] sm:$0xff]  ;;  %v290_v32 = vld [vmem:[%s850_s2 + $0x60] sm:$0xff] }
   0x9   :  { %311 = vperm.xlu1 %667, %v281_v11   ;;  %301 = vperm.xlu0 %666, %v279_v12   ;;  %v73_v26 = vld [vmem:[%s849_s0 + $0x18] sm:$0xff]  ;;  %v76_v29 = vunpack.c.l.s8.bf16 %v71_v25  ;;  %v291_v31 = vld [vmem:[%s850_s2 + $0x68] sm:$0xff]  ;;  %v292_v34 = vld [vmem:[%s850_s2 + $0x70] sm:$0xff]  ;;  %v77_v35 = vunpack.c.h.s8.bf16 %v71_v25 }
   0xa   :  { %v80_v30 = vunpack.c.l.s8.bf16 %v73_v26  ;;  %v293_v33 = vld [vmem:[%s850_s2 + $0x78] sm:$0xff]  ;;  %v81_v36 = vunpack.c.h.s8.bf16 %v73_v26  ;;  %v803_v52 = vld [vmem:[%s851_s3] ss:$0 sm:$0xff] }
   0xb   :  { %622 = vmatpush3.bf16.msra.mxu0 %v670_v3  ;;  %659 = vmatpush3.bf16.msra.mxu1 %v670_v3 }
   0xc   :  { %623 = vmatprep.subr.bf16.mxu0 %v671_v4  ;;  %652 = vmatprep.subr.bf16.mxu1 %v671_v4 }
   0xd   :  { %321 = vperm.xlu1 %667, %v283_v14   ;;  %316 = vperm.xlu0 %666, %v282_v15  }
   0xf   :  { %624 = vmatpush3.bf16.msra.mxu0 %v671_v4  ;;  %660 = vmatpush3.bf16.msra.mxu1 %v671_v4 }
  0x10   :  { %625 = vmatprep.subr.bf16.mxu0 %v672_v13  ;;  %653 = vmatprep.subr.bf16.mxu1 %v672_v13 }
  0x11   :  { %331 = vperm.xlu1 %667, %v285_v17   ;;  %326 = vperm.xlu0 %666, %v284_v18  }
  0x13   :  { %626 = vmatpush3.bf16.msra.mxu0 %v672_v13  ;;  %661 = vmatpush3.bf16.msra.mxu1 %v672_v13 }
  0x14   :  { %627 = vmatprep.subr.bf16.mxu0 %v673_v16  ;;  %654 = vmatprep.subr.bf16.mxu1 %v673_v16 }
  0x15   :  { %341 = vperm.xlu1 %667, %v287_v20   ;;  %336 = vperm.xlu0 %666, %v286_v21  }
  0x17   :  { %628 = vmatpush3.bf16.msra.mxu0 %v673_v16  ;;  %662 = vmatpush3.bf16.msra.mxu1 %v673_v16 }
  0x18   :  { %629 = vmatprep.subr.bf16.mxu0 %v674_v19  ;;  %655 = vmatprep.subr.bf16.mxu1 %v674_v19 }
  0x19   :  { %351 = vperm.xlu1 %667, %v289_v23   ;;  %346 = vperm.xlu0 %666, %v288_v24  }
  0x1b   :  { %630 = vmatpush3.bf16.msra.mxu0 %v674_v19  ;;  %663 = vmatpush3.bf16.msra.mxu1 %v674_v19 }
  0x1c   :  { %631 = vmatprep.subr.bf16.mxu0 %v675_v22  ;;  %656 = vmatprep.subr.bf16.mxu1 %v675_v22 }
  0x1d   :  { %361 = vperm.xlu1 %667, %v291_v31   ;;  %356 = vperm.xlu0 %666, %v290_v32  }
  0x1f   :  { %632 = vmatpush3.bf16.msra.mxu0 %v675_v22  ;;  %664 = vmatpush3.bf16.msra.mxu1 %v675_v22 }
  0x21   :  { %371 = vperm.xlu1 %667, %v293_v33   ;;  %366 = vperm.xlu0 %666, %v292_v34  }
  0x22   :  { %634 = vmatmul.mubr.bf16.vlgmr.msra.gmra.mrb[0].mxu0 %v75_v27  ;;  %642 = vmatmul.mubr.bf16.vlgmr.msra.gmra.mrb[0].mxu1 %v79_v28 }
  0x23   :  { %637 = vmatprep.mubr.bf16.mxu0 %v76_v29  ;;  %645 = vmatprep.mubr.bf16.mxu1 %v80_v30 }
  0x2a   :  { %638 = vmatmul.mubr.bf16.gmra.mrb[4].mxu0 %v77_v35  ;;  %646 = vmatmul.mubr.bf16.gmra.mrb[4].mxu1 %v81_v36 }
  0x84   :  { %v307_v37 = vpop.permute.xlu1 %306  ;;  %v297_v38 = vpop.permute.xlu0 %296 }
  0x88   :  { %v312_v39 = vpop.permute.xlu1 %311  ;;  %v302_v40 = vpop.permute.xlu0 %301 }
  0x8c   :  { %v794_v41 = vpop.permute.xlu1 %321  ;;  %v317_v42 = vpop.permute.xlu0 %316 }
  0x90   :  { %v796_v43 = vpop.permute.xlu1 %331  ;;  %v327_v44 = vpop.permute.xlu0 %326 }
  0x94   :  { %v342_v45 = vpop.permute.xlu1 %341  ;;  %v337_v46 = vpop.permute.xlu0 %336 }
  0x98   :  { %v352_v47 = vpop.permute.xlu1 %351  ;;  %v347_v48 = vpop.permute.xlu0 %346 }
  0x9c   :  { %v798_v49 = vpop.permute.xlu1 %361  ;;  %v357_v50 = vpop.permute.xlu0 %356 }
  0xa0   :  { %v372_v12 = vpop.permute.xlu1 %371  ;;  %v367_v13 = vpop.permute.xlu0 %366 }
  0xf5   :  { %v635_v51 = vpop.f32.mrb[0].mxu0  ;;  %v643_v53 = vpop.f32.mrb[0].mxu1 }
  0xf6   :  { %v376_v54 = vmul.f32 %v635_v51, %v307_v37  ;;  %v384_v55 = vmul.f32 %v643_v53, %v347_v48  ;;  %v164_v56 = vpop.f32.mrb[1].mxu0  ;;  %v196_v57 = vpop.f32.mrb[1].mxu1 }
  0xf7   :  { %v374_v58 = vmul.f32 %v297_v38, %v164_v56  ;;  %v382_v59 = vmul.f32 %v337_v46, %v196_v57  ;;  %v636_v60 = vpop.f32.mrb[2].mxu0  ;;  %v644_v61 = vpop.f32.mrb[2].mxu1 }
  0xf8   :  { %v399_v62 = vadd.f32 %v803_v52, %v376_v54  ;;  %v407_v63 = vadd.f32 %v803_v52, %v384_v55  ;;  %v377_v0 = vmul.f32 %v636_v60, %v312_v39  ;;  %v385_v1 = vmul.f32 %v644_v61, %v352_v47  ;;  %v167_v2 = vpop.f32.mrb[3].mxu0  ;;  %v199_v3 = vpop.f32.mrb[3].mxu1 }
  0xf9   :  { %v397_v4 = vadd.f32 %v803_v52, %v374_v58  ;;  %v405_v5 = vadd.f32 %v803_v52, %v382_v59  ;;  %v375_v6 = vmul.f32 %v302_v40, %v167_v2  ;;  %v383_v7 = vmul.f32 %v342_v45, %v199_v3 }
  0xfa   :  { %v400_v8 = vadd.f32 %v803_v52, %v377_v0  ;;  %v408_v9 = vadd.f32 %v803_v52, %v385_v1  ;;  %v415_v14 = vmax.f32 %v399_v62, 0.0  ;;  %v423_v15 = vmax.f32 %v407_v63, 0.0 }
  0xfb   :  { %v398_v10 = vadd.f32 %v803_v52, %v375_v6  ;;  %v406_v11 = vadd.f32 %v803_v52, %v383_v7  ;;  %v413_v18 = vmax.f32 %v397_v4, 0.0  ;;  %v421_v19 = vmax.f32 %v405_v5, 0.0 }
  0xfc   :  { %v416_v16 = vmax.f32 %v400_v8, 0.0  ;;  %v424_v17 = vmax.f32 %v408_v9, 0.0 }
  0xfd   :  { %v414_v20 = vmax.f32 %v398_v10, 0.0  ;;  %v422_v21 = vmax.f32 %v406_v11, 0.0  ;;  %v639_v22 = vpop.f32.mrb[4].mxu0  ;;  %v647_v23 = vpop.f32.mrb[4].mxu1 }
  0xfe   :  { %v562_v24 = vpack.c.bf16 %v416_v16, %v415_v14  ;;  %v582_v25 = vpack.c.bf16 %v424_v17, %v423_v15  ;;  %v380_v26 = vmul.f32 %v639_v22, %v327_v44  ;;  %v388_v27 = vmul.f32 %v647_v23, %v367_v13  ;;  %v180_v28 = vpop.f32.mrb[5].mxu0  ;;  %v212_v29 = vpop.f32.mrb[5].mxu1 }
  0xff   :  { %v557_v30 = vpack.c.bf16 %v414_v20, %v413_v18  ;;  %v577_v31 = vpack.c.bf16 %v422_v21, %v421_v19  ;;  %v378_v32 = vmul.f32 %v317_v42, %v180_v28  ;;  %v386_v33 = vmul.f32 %v357_v50, %v212_v29  ;;  %v640_v34 = vpop.f32.mrb[6].mxu0  ;;  %v648_v35 = vpop.f32.mrb[6].mxu1 }
 0x100   :  { %594 = vst [vmem:[%s852_s4 + $0x8] sm:$0xff] %v562_v24   ;;  %598 = vst [vmem:[%s852_s4 + $0x28] sm:$0xff] %v582_v25   ;;  %v403_v36 = vadd.f32 %v803_v52, %v380_v26  ;;  %v411_v37 = vadd.f32 %v803_v52, %v388_v27  ;;  %v381_v38 = vmul.f32 %v640_v34, %v796_v43  ;;  %v183_v40 = vpop.f32.mrb[7].mxu0  ;;  %v215_v42 = vpop.f32.mrb[7].mxu1 }
 0x101   :  { %v389_v39 = vmul.f32 %v648_v35, %v372_v12  ;;  %558 = vst [vmem:[%s852_s4] sm:$0xff] %v557_v30   ;;  %597 = vst [vmem:[%s852_s4 + $0x20] sm:$0xff] %v577_v31   ;;  %v401_v44 = vadd.f32 %v803_v52, %v378_v32  ;;  %v409_v45 = vadd.f32 %v803_v52, %v386_v33 }
 0x102   :  { %v379_v46 = vmul.f32 %v794_v41, %v183_v40  ;;  %v387_v47 = vmul.f32 %v798_v49, %v215_v42  ;;  %v404_v43 = vadd.f32 %v803_v52, %v381_v38  ;;  %v419_v53 = vmax.f32 %v403_v36, 0.0 }
 0x103   :  { %v412_v48 = vadd.f32 %v803_v52, %v389_v39  ;;  %v427_v54 = vmax.f32 %v411_v37, 0.0  ;;  %v417_v57 = vmax.f32 %v401_v44, 0.0  ;;  %v425_v58 = vmax.f32 %v409_v45, 0.0 }
 0x104   :  { %v402_v50 = vadd.f32 %v803_v52, %v379_v46  ;;  %v410_v51 = vadd.f32 %v803_v52, %v387_v47  ;;  %v420_v55 = vmax.f32 %v404_v43, 0.0 }
 0x105   :  { %v428_v56 = vmax.f32 %v412_v48, 0.0 }
 0x106   :  { %v418_v59 = vmax.f32 %v402_v50, 0.0  ;;  %v426_v60 = vmax.f32 %v410_v51, 0.0  ;;  %v572_v61 = vpack.c.bf16 %v420_v55, %v419_v53 }
 0x107   :  { %v592_v41 = vpack.c.bf16 %v428_v56, %v427_v54 }
 0x108   :  { %v567_v62 = vpack.c.bf16 %v418_v59, %v417_v57  ;;  %v587_v49 = vpack.c.bf16 %v426_v60, %v425_v58  ;;  %596 = vst [vmem:[%s852_s4 + $0x18] sm:$0xff] %v572_v61  }
 0x109   :  { %600 = vst [vmem:[%s852_s4 + $0x38] sm:$0xff] %v592_v41  }
 0x10a   :  { %595 = vst [vmem:[%s852_s4 + $0x10] sm:$0xff] %v567_v62   ;;  %599 = vst [vmem:[%s852_s4 + $0x30] sm:$0xff] %v587_v49  }

// kernel: gcn_encoder_forward.4
= control target key start
LH: loop header
LB: loop body
LE: loop exit
PB: predicated region body
PF: predicated region fallthrough
CT: control target
= control target key end

     0   :  { %v614_v1 = vmov 0   ;;  %s755_s1 = inlined_call_operand.vmem [shape: bf16[128,128], index: 1, kind: input, shape index: {}]   ;;  %s756_s0 = inlined_call_operand.vmem [shape: bf16[128,128], index: 0, kind: input, shape index: {}]   ;;  %s757_s2 = inlined_call_operand.vmem [shape: f32[128,1], index: 2, kind: input, shape index: {}]   ;;  %s758_s3 = inlined_call_operand.vmem [shape: bf16[128,128], index: 3, kind: output, shape index: {}]  }
   0x1   :  { %v598_v0 = vld [vmem:[%s755_s1] sm:$0xff]   ;;  %597 = vset.pattern.permute.xlu1 %v614_v1  ;;  %596 = vset.pattern.permute.xlu0 %v614_v1  ;;  %v599_v2 = vld [vmem:[%s755_s1 + $0x8] sm:$0xff]   ;;  %v600_v3 = vld [vmem:[%s755_s1 + $0x10] sm:$0xff]  }
   0x2   :  { %547 = vmatprep.subr.bf16.mxu0 %v598_v0  ;;  %579 = vmatprep.subr.bf16.mxu1 %v598_v0  ;;  %v601_v4 = vld [vmem:[%s755_s1 + $0x18] sm:$0xff]   ;;  %v606_v5 = vld [vmem:[%s756_s0] sm:$0xff]   ;;  %v603_v8 = vld [vmem:[%s755_s1 + $0x28] sm:$0xff]  }
   0x3   :  { %548 = vmatpush3.bf16.msra.mxu0 %v598_v0  ;;  %587 = vmatpush3.bf16.msra.mxu1 %v598_v0  ;;  %v607_v6 = vld [vmem:[%s756_s0 + $0x20] sm:$0xff]   ;;  %v242_v9 = vld [vmem:[%s757_s2 + $0x10] sm:$0xff]  ;;  %v243_v11 = vld [vmem:[%s757_s2 + $0x18] sm:$0xff] }
   0x4   :  { %549 = vmatprep.subr.bf16.mxu0 %v599_v2  ;;  %580 = vmatprep.subr.bf16.mxu1 %v599_v2  ;;  %v602_v7 = vld [vmem:[%s755_s1 + $0x20] sm:$0xff]   ;;  %v241_v12 = vld [vmem:[%s757_s2 + $0x8] sm:$0xff]  ;;  %v604_v13 = vld [vmem:[%s755_s1 + $0x30] sm:$0xff]  }
   0x5   :  { %563 = vmatprep.mubr.bf16.mxu0 %v606_v5  ;;  %571 = vmatprep.mubr.bf16.mxu1 %v607_v6  ;;  %v240_v10 = vld [vmem:[%s757_s2] sm:$0xff]  ;;  %v245_v14 = vld [vmem:[%s757_s2 + $0x28] sm:$0xff]  ;;  %v605_v16 = vld [vmem:[%s755_s1 + $0x38] sm:$0xff]  }
   0x6   :  { %268 = vperm.xlu1 %597, %v242_v9   ;;  %258 = vperm.xlu0 %596, %v240_v10   ;;  %v244_v15 = vld [vmem:[%s757_s2 + $0x20] sm:$0xff]  ;;  %v247_v17 = vld [vmem:[%s757_s2 + $0x38] sm:$0xff]  ;;  %v246_v18 = vld [vmem:[%s757_s2 + $0x30] sm:$0xff] }
   0x7   :  { %550 = vmatpush3.bf16.msra.mxu0 %v599_v2  ;;  %588 = vmatpush3.bf16.msra.mxu1 %v599_v2  ;;  %v608_v19 = vld [vmem:[%s756_s0 + $0x8] sm:$0xff]   ;;  %v248_v22 = vld [vmem:[%s757_s2 + $0x40] sm:$0xff]  ;;  %v610_v23 = vld [vmem:[%s756_s0 + $0x10] sm:$0xff]  }
   0x8   :  { %551 = vmatprep.subr.bf16.mxu0 %v600_v3  ;;  %581 = vmatprep.subr.bf16.mxu1 %v600_v3  ;;  %v609_v20 = vld [vmem:[%s756_s0 + $0x28] sm:$0xff]   ;;  %v611_v24 = vld [vmem:[%s756_s0 + $0x30] sm:$0xff]   ;;  %v251_v25 = vld [vmem:[%s757_s2 + $0x58] sm:$0xff] }
   0x9   :  { %v249_v21 = vld [vmem:[%s757_s2 + $0x48] sm:$0xff]  ;;  %v250_v26 = vld [vmem:[%s757_s2 + $0x50] sm:$0xff]  ;;  %v612_v27 = vld [vmem:[%s756_s0 + $0x18] sm:$0xff]  }
   0xa   :  { %273 = vperm.xlu1 %597, %v243_v11   ;;  %263 = vperm.xlu0 %596, %v241_v12   ;;  %v613_v28 = vld [vmem:[%s756_s0 + $0x38] sm:$0xff]   ;;  %v253_v29 = vld [vmem:[%s757_s2 + $0x68] sm:$0xff]  ;;  %v252_v30 = vld [vmem:[%s757_s2 + $0x60] sm:$0xff] }
   0xb   :  { %552 = vmatpush3.bf16.msra.mxu0 %v600_v3  ;;  %589 = vmatpush3.bf16.msra.mxu1 %v600_v3  ;;  %v255_v31 = vld [vmem:[%s757_s2 + $0x78] sm:$0xff]  ;;  %v254_v32 = vld [vmem:[%s757_s2 + $0x70] sm:$0xff] }
   0xc   :  { %553 = vmatprep.subr.bf16.mxu0 %v601_v4  ;;  %582 = vmatprep.subr.bf16.mxu1 %v601_v4 }
   0xe   :  { %283 = vperm.xlu1 %597, %v245_v14   ;;  %278 = vperm.xlu0 %596, %v244_v15  }
   0xf   :  { %554 = vmatpush3.bf16.msra.mxu0 %v601_v4  ;;  %590 = vmatpush3.bf16.msra.mxu1 %v601_v4 }
  0x10   :  { %555 = vmatprep.subr.bf16.mxu0 %v602_v7  ;;  %583 = vmatprep.subr.bf16.mxu1 %v602_v7 }
  0x12   :  { %293 = vperm.xlu1 %597, %v247_v17   ;;  %288 = vperm.xlu0 %596, %v246_v18  }
  0x13   :  { %556 = vmatpush3.bf16.msra.mxu0 %v602_v7  ;;  %591 = vmatpush3.bf16.msra.mxu1 %v602_v7 }
  0x14   :  { %557 = vmatprep.subr.bf16.mxu0 %v603_v8  ;;  %584 = vmatprep.subr.bf16.mxu1 %v603_v8 }
  0x16   :  { %303 = vperm.xlu1 %597, %v249_v21   ;;  %298 = vperm.xlu0 %596, %v248_v22  }
  0x17   :  { %558 = vmatpush3.bf16.msra.mxu0 %v603_v8  ;;  %592 = vmatpush3.bf16.msra.mxu1 %v603_v8 }
  0x18   :  { %559 = vmatprep.subr.bf16.mxu0 %v604_v13  ;;  %585 = vmatprep.subr.bf16.mxu1 %v604_v13 }
  0x1a   :  { %313 = vperm.xlu1 %597, %v251_v25   ;;  %308 = vperm.xlu0 %596, %v250_v26  }
  0x1b   :  { %560 = vmatpush3.bf16.msra.mxu0 %v604_v13  ;;  %593 = vmatpush3.bf16.msra.mxu1 %v604_v13 }
  0x1c   :  { %561 = vmatprep.subr.bf16.mxu0 %v605_v16  ;;  %586 = vmatprep.subr.bf16.mxu1 %v605_v16 }
  0x1e   :  { %323 = vperm.xlu1 %597, %v253_v29   ;;  %318 = vperm.xlu0 %596, %v252_v30  }
  0x1f   :  { %562 = vmatpush3.bf16.msra.mxu0 %v605_v16  ;;  %594 = vmatpush3.bf16.msra.mxu1 %v605_v16 }
  0x22   :  { %564 = vmatmul.mubr.bf16.vlgmr.msra.gmra.mrb[0].mxu0 %v608_v19  ;;  %572 = vmatmul.mubr.bf16.vlgmr.msra.gmra.mrb[0].mxu1 %v609_v20 }
  0x23   :  { %567 = vmatprep.mubr.bf16.mxu0 %v610_v23  ;;  %575 = vmatprep.mubr.bf16.mxu1 %v611_v24 }
  0x24   :  { %333 = vperm.xlu1 %597, %v255_v31   ;;  %328 = vperm.xlu0 %596, %v254_v32  }
  0x2a   :  { %568 = vmatmul.mubr.bf16.gmra.mrb[4].mxu0 %v612_v27  ;;  %576 = vmatmul.mubr.bf16.gmra.mrb[4].mxu1 %v613_v28 }
  0x85   :  { %v269_v33 = vpop.permute.xlu1 %268  ;;  %v259_v34 = vpop.permute.xlu0 %258 }
  0x89   :  { %v274_v35 = vpop.permute.xlu1 %273  ;;  %v264_v36 = vpop.permute.xlu0 %263 }
  0x8d   :  { %v284_v37 = vpop.permute.xlu1 %283  ;;  %v279_v38 = vpop.permute.xlu0 %278 }
  0x91   :  { %v294_v39 = vpop.permute.xlu1 %293  ;;  %v289_v40 = vpop.permute.xlu0 %288 }
  0x95   :  { %v304_v41 = vpop.permute.xlu1 %303  ;;  %v299_v42 = vpop.permute.xlu0 %298 }
  0x99   :  { %v314_v43 = vpop.permute.xlu1 %313  ;;  %v309_v44 = vpop.permute.xlu0 %308 }
  0x9d   :  { %v324_v45 = vpop.permute.xlu1 %323  ;;  %v319_v46 = vpop.permute.xlu0 %318 }
  0xa3   :  { %v334_v3 = vpop.permute.xlu1 %333  ;;  %v329_v4 = vpop.permute.xlu0 %328 }
  0xf5   :  { %v565_v47 = vpop.f32.mrb[0].mxu0  ;;  %v573_v48 = vpop.f32.mrb[0].mxu1 }
  0xf6   :  { %v177_v49 = vpop.f32.mrb[1].mxu0  ;;  %v209_v50 = vpop.f32.mrb[1].mxu1  ;;  %v338_v53 = vmul.f32 %v565_v47, %v269_v33  ;;  %v346_v54 = vmul.f32 %v573_v48, %v309_v44 }
  0xf7   :  { %v566_v51 = vpop.f32.mrb[2].mxu0  ;;  %v574_v52 = vpop.f32.mrb[2].mxu1  ;;  %v336_v59 = vmul.f32 %v259_v34, %v177_v49  ;;  %v344_v60 = vmul.f32 %v299_v42, %v209_v50 }
  0xf8   :  { %v339_v55 = vmul.f32 %v566_v51, %v274_v35  ;;  %v347_v56 = vmul.f32 %v574_v52, %v314_v43  ;;  %v180_v57 = vpop.f32.mrb[3].mxu0  ;;  %v212_v58 = vpop.f32.mrb[3].mxu1 }
  0xf9   :  { %v337_v61 = vmul.f32 %v264_v36, %v180_v57  ;;  %v345_v62 = vmul.f32 %v304_v41, %v212_v58 }
  0xfa   :  { %v492_v63 = vpack.c.bf16 %v339_v55, %v338_v53  ;;  %v512_v0 = vpack.c.bf16 %v347_v56, %v346_v54 }
  0xfb   :  { %v487_v1 = vpack.c.bf16 %v337_v61, %v336_v59  ;;  %v507_v2 = vpack.c.bf16 %v345_v62, %v344_v60 }
  0xfc   :  { %524 = vst [vmem:[%s758_s3 + $0x8] sm:$0xff] %v492_v63   ;;  %528 = vst [vmem:[%s758_s3 + $0x28] sm:$0xff] %v512_v0  }
  0xfd   :  { %488 = vst [vmem:[%s758_s3] sm:$0xff] %v487_v1   ;;  %527 = vst [vmem:[%s758_s3 + $0x20] sm:$0xff] %v507_v2   ;;  %v569_v5 = vpop.f32.mrb[4].mxu0  ;;  %v577_v6 = vpop.f32.mrb[4].mxu1 }
  0xfe   :  { %v193_v7 = vpop.f32.mrb[5].mxu0  ;;  %v225_v8 = vpop.f32.mrb[5].mxu1  ;;  %v342_v11 = vmul.f32 %v569_v5, %v289_v40  ;;  %v350_v12 = vmul.f32 %v577_v6, %v329_v4 }
  0xff   :  { %v570_v9 = vpop.f32.mrb[6].mxu0  ;;  %v578_v10 = vpop.f32.mrb[6].mxu1  ;;  %v340_v17 = vmul.f32 %v279_v38, %v193_v7  ;;  %v348_v18 = vmul.f32 %v319_v46, %v225_v8 }
 0x100   :  { %v343_v13 = vmul.f32 %v570_v9, %v294_v39  ;;  %v351_v14 = vmul.f32 %v578_v10, %v334_v3  ;;  %v196_v15 = vpop.f32.mrb[7].mxu0  ;;  %v228_v16 = vpop.f32.mrb[7].mxu1 }
 0x101   :  { %v341_v19 = vmul.f32 %v284_v37, %v196_v15  ;;  %v349_v20 = vmul.f32 %v324_v45, %v228_v16 }
 0x102   :  { %v502_v21 = vpack.c.bf16 %v343_v13, %v342_v11  ;;  %v522_v22 = vpack.c.bf16 %v351_v14, %v350_v12 }
 0x103   :  { %v497_v23 = vpack.c.bf16 %v341_v19, %v340_v17  ;;  %v517_v24 = vpack.c.bf16 %v349_v20, %v348_v18 }
 0x104   :  { %526 = vst [vmem:[%s758_s3 + $0x18] sm:$0xff] %v502_v21   ;;  %530 = vst [vmem:[%s758_s3 + $0x38] sm:$0xff] %v522_v22  }
 0x105   :  { %525 = vst [vmem:[%s758_s3 + $0x10] sm:$0xff] %v497_v23   ;;  %529 = vst [vmem:[%s758_s3 + $0x30] sm:$0xff] %v517_v24  }

// kernel: gcn_encoder_forward.7
= control target key start
LH: loop header
LB: loop body
LE: loop exit
PB: predicated region body
PF: predicated region fallthrough
CT: control target
= control target key end

     0   :  { %v517_v1 = vmov 0   ;;  %s689_s1 = inlined_call_operand.vmem [shape: bf16[128,128], index: 1, kind: input, shape index: {}]   ;;  %s690_s0 = inlined_call_operand.vmem [shape: s8[128,128], index: 0, kind: input, shape index: {}]   ;;  %s691_s2 = inlined_call_operand.vmem [shape: f32[128,1], index: 2, kind: input, shape index: {}]   ;;  %s692_s3 = inlined_call_operand.vmem [shape: f32[1,128], index: 3, kind: input, shape index: {}]   ;;  %s693_s4 = inlined_call_operand.vmem [shape: f32[128,128], index: 4, kind: output, shape index: {}]  }
   0x1   :  { %v509_v0 = vld [vmem:[%s689_s1] sm:$0xff]   ;;  %508 = vset.pattern.permute.xlu1 %v517_v1  ;;  %507 = vset.pattern.permute.xlu0 %v517_v1  ;;  %v510_v2 = vld [vmem:[%s689_s1 + $0x8] sm:$0xff]   ;;  %v511_v3 = vld [vmem:[%s689_s1 + $0x10] sm:$0xff]  }
   0x2   :  { %458 = vmatprep.subr.bf16.mxu0 %v509_v0  ;;  %490 = vmatprep.subr.bf16.mxu1 %v509_v0  ;;  %v512_v4 = vld [vmem:[%s689_s1 + $0x18] sm:$0xff]   ;;  %v558_v5 = vld [vmem:[%s690_s0] sm:$0xff]  ;;  %v563_v6 = vld [vmem:[%s690_s0 + $0x10] sm:$0xff] }
   0x3   :  { %459 = vmatpush3.bf16.msra.mxu0 %v509_v0  ;;  %498 = vmatpush3.bf16.msra.mxu1 %v509_v0  ;;  %v74_v7 = vunpack.c.l.s8.bf16 %v558_v5  ;;  %v78_v8 = vunpack.c.l.s8.bf16 %v563_v6  ;;  %v280_v9 = vld [vmem:[%s691_s2 + $0x10] sm:$0xff]  ;;  %v278_v10 = vld [vmem:[%s691_s2] sm:$0xff]  ;;  %v281_v11 = vld [vmem:[%s691_s2 + $0x18] sm:$0xff]  ;;  %v75_v27 = vunpack.c.h.s8.bf16 %v558_v5  ;;  %v79_v28 = vunpack.c.h.s8.bf16 %v563_v6 }
   0x4   :  { %460 = vmatprep.subr.bf16.mxu0 %v510_v2  ;;  %491 = vmatprep.subr.bf16.mxu1 %v510_v2  ;;  %v279_v12 = vld [vmem:[%s691_s2 + $0x8] sm:$0xff]  ;;  %v513_v13 = vld [vmem:[%s689_s1 + $0x20] sm:$0xff]   ;;  %v285_v17 = vld [vmem:[%s691_s2 + $0x38] sm:$0xff] }
   0x5   :  { %306 = vperm.xlu1 %508, %v280_v9   ;;  %296 = vperm.xlu0 %507, %v278_v10   ;;  %v283_v14 = vld [vmem:[%s691_s2 + $0x28] sm:$0xff]  ;;  %v282_v15 = vld [vmem:[%s691_s2 + $0x20] sm:$0xff]  ;;  %v284_v18 = vld [vmem:[%s691_s2 + $0x30] sm:$0xff] }
   0x6   :  { %474 = vmatprep.mubr.bf16.mxu0 %v74_v7  ;;  %482 = vmatprep.mubr.bf16.mxu1 %v78_v8  ;;  %v514_v16 = vld [vmem:[%s689_s1 + $0x28] sm:$0xff]   ;;  %v515_v19 = vld [vmem:[%s689_s1 + $0x30] sm:$0xff]   ;;  %v286_v21 = vld [vmem:[%s691_s2 + $0x40] sm:$0xff] }
   0x7   :  { %461 = vmatpush3.bf16.msra.mxu0 %v510_v2  ;;  %499 = vmatpush3.bf16.msra.mxu1 %v510_v2  ;;  %v287_v20 = vld [vmem:[%s691_s2 + $0x48] sm:$0xff]  ;;  %v516_v22 = vld [vmem:[%s689_s1 + $0x38] sm:$0xff]   ;;  %v288_v24 = vld [vmem:[%s691_s2 + $0x50] sm:$0xff] }
   0x8   :  { %462 = vmatprep.subr.bf16.mxu0 %v511_v3  ;;  %492 = vmatprep.subr.bf16.mxu1 %v511_v3  ;;  %v289_v23 = vld [vmem:[%s691_s2 + $0x58] sm:$0xff]  ;;  %v71_v25 = vld [vmem:[%s690_s0 + $0x8] sm:$0xff]  ;;  %v290_v32 = vld [vmem:[%s691_s2 + $0x60] sm:$0xff] }
   0x9   :  { %311 = vperm.xlu1 %508, %v281_v11   ;;  %301 = vperm.xlu0 %507, %v279_v12   ;;  %v73_v26 = vld [vmem:[%s690_s0 + $0x18] sm:$0xff]  ;;  %v76_v29 = vunpack.c.l.s8.bf16 %v71_v25  ;;  %v291_v31 = vld [vmem:[%s691_s2 + $0x68] sm:$0xff]  ;;  %v292_v34 = vld [vmem:[%s691_s2 + $0x70] sm:$0xff]  ;;  %v77_v35 = vunpack.c.h.s8.bf16 %v71_v25 }
   0xa   :  { %v80_v30 = vunpack.c.l.s8.bf16 %v73_v26  ;;  %v293_v33 = vld [vmem:[%s691_s2 + $0x78] sm:$0xff]  ;;  %v81_v36 = vunpack.c.h.s8.bf16 %v73_v26  ;;  %v441_v52 = vld [vmem:[%s692_s3] ss:$0 sm:$0xff] }
   0xb   :  { %463 = vmatpush3.bf16.msra.mxu0 %v511_v3  ;;  %500 = vmatpush3.bf16.msra.mxu1 %v511_v3 }
   0xc   :  { %464 = vmatprep.subr.bf16.mxu0 %v512_v4  ;;  %493 = vmatprep.subr.bf16.mxu1 %v512_v4 }
   0xd   :  { %321 = vperm.xlu1 %508, %v283_v14   ;;  %316 = vperm.xlu0 %507, %v282_v15  }
   0xf   :  { %465 = vmatpush3.bf16.msra.mxu0 %v512_v4  ;;  %501 = vmatpush3.bf16.msra.mxu1 %v512_v4 }
  0x10   :  { %466 = vmatprep.subr.bf16.mxu0 %v513_v13  ;;  %494 = vmatprep.subr.bf16.mxu1 %v513_v13 }
  0x11   :  { %331 = vperm.xlu1 %508, %v285_v17   ;;  %326 = vperm.xlu0 %507, %v284_v18  }
  0x13   :  { %467 = vmatpush3.bf16.msra.mxu0 %v513_v13  ;;  %502 = vmatpush3.bf16.msra.mxu1 %v513_v13 }
  0x14   :  { %468 = vmatprep.subr.bf16.mxu0 %v514_v16  ;;  %495 = vmatprep.subr.bf16.mxu1 %v514_v16 }
  0x15   :  { %341 = vperm.xlu1 %508, %v287_v20   ;;  %336 = vperm.xlu0 %507, %v286_v21  }
  0x17   :  { %469 = vmatpush3.bf16.msra.mxu0 %v514_v16  ;;  %503 = vmatpush3.bf16.msra.mxu1 %v514_v16 }
  0x18   :  { %470 = vmatprep.subr.bf16.mxu0 %v515_v19  ;;  %496 = vmatprep.subr.bf16.mxu1 %v515_v19 }
  0x19   :  { %351 = vperm.xlu1 %508, %v289_v23   ;;  %346 = vperm.xlu0 %507, %v288_v24  }
  0x1b   :  { %471 = vmatpush3.bf16.msra.mxu0 %v515_v19  ;;  %504 = vmatpush3.bf16.msra.mxu1 %v515_v19 }
  0x1c   :  { %472 = vmatprep.subr.bf16.mxu0 %v516_v22  ;;  %497 = vmatprep.subr.bf16.mxu1 %v516_v22 }
  0x1d   :  { %361 = vperm.xlu1 %508, %v291_v31   ;;  %356 = vperm.xlu0 %507, %v290_v32  }
  0x1f   :  { %473 = vmatpush3.bf16.msra.mxu0 %v516_v22  ;;  %505 = vmatpush3.bf16.msra.mxu1 %v516_v22 }
  0x21   :  { %371 = vperm.xlu1 %508, %v293_v33   ;;  %366 = vperm.xlu0 %507, %v292_v34  }
  0x22   :  { %475 = vmatmul.mubr.bf16.vlgmr.msra.gmra.mrb[0].mxu0 %v75_v27  ;;  %483 = vmatmul.mubr.bf16.vlgmr.msra.gmra.mrb[0].mxu1 %v79_v28 }
  0x23   :  { %478 = vmatprep.mubr.bf16.mxu0 %v76_v29  ;;  %486 = vmatprep.mubr.bf16.mxu1 %v80_v30 }
  0x2a   :  { %479 = vmatmul.mubr.bf16.gmra.mrb[4].mxu0 %v77_v35  ;;  %487 = vmatmul.mubr.bf16.gmra.mrb[4].mxu1 %v81_v36 }
  0x84   :  { %v307_v37 = vpop.permute.xlu1 %306  ;;  %v297_v38 = vpop.permute.xlu0 %296 }
  0x88   :  { %v312_v39 = vpop.permute.xlu1 %311  ;;  %v302_v40 = vpop.permute.xlu0 %301 }
  0x8c   :  { %v635_v41 = vpop.permute.xlu1 %321  ;;  %v317_v42 = vpop.permute.xlu0 %316 }
  0x90   :  { %v332_v43 = vpop.permute.xlu1 %331  ;;  %v327_v44 = vpop.permute.xlu0 %326 }
  0x94   :  { %v342_v45 = vpop.permute.xlu1 %341  ;;  %v337_v46 = vpop.permute.xlu0 %336 }
  0x98   :  { %v352_v47 = vpop.permute.xlu1 %351  ;;  %v347_v48 = vpop.permute.xlu0 %346 }
  0x9c   :  { %v362_v49 = vpop.permute.xlu1 %361  ;;  %v357_v50 = vpop.permute.xlu0 %356 }
  0xa0   :  { %v372_v12 = vpop.permute.xlu1 %371  ;;  %v367_v13 = vpop.permute.xlu0 %366 }
  0xf5   :  { %v476_v51 = vpop.f32.mrb[0].mxu0  ;;  %v484_v53 = vpop.f32.mrb[0].mxu1 }
  0xf6   :  { %v376_v54 = vmul.f32 %v476_v51, %v307_v37  ;;  %v384_v55 = vmul.f32 %v484_v53, %v347_v48  ;;  %v164_v56 = vpop.f32.mrb[1].mxu0  ;;  %v196_v57 = vpop.f32.mrb[1].mxu1 }
  0xf7   :  { %v374_v58 = vmul.f32 %v297_v38, %v164_v56  ;;  %v382_v59 = vmul.f32 %v337_v46, %v196_v57  ;;  %v477_v60 = vpop.f32.mrb[2].mxu0  ;;  %v485_v61 = vpop.f32.mrb[2].mxu1 }
  0xf8   :  { %v399_v62 = vadd.f32 %v441_v52, %v376_v54  ;;  %v407_v63 = vadd.f32 %v441_v52, %v384_v55  ;;  %v377_v0 = vmul.f32 %v477_v60, %v312_v39  ;;  %v385_v1 = vmul.f32 %v485_v61, %v352_v47  ;;  %v167_v2 = vpop.f32.mrb[3].mxu0  ;;  %v199_v3 = vpop.f32.mrb[3].mxu1 }
  0xf9   :  { %v397_v4 = vadd.f32 %v441_v52, %v374_v58  ;;  %v405_v5 = vadd.f32 %v441_v52, %v382_v59  ;;  %v375_v6 = vmul.f32 %v302_v40, %v167_v2  ;;  %v383_v7 = vmul.f32 %v342_v45, %v199_v3 }
  0xfa   :  { %415 = vst [vmem:[%s693_s4 + $0x10] sm:$0xff] %v399_v62  ;;  %423 = vst [vmem:[%s693_s4 + $0x50] sm:$0xff] %v407_v63  ;;  %v400_v8 = vadd.f32 %v441_v52, %v377_v0  ;;  %v408_v9 = vadd.f32 %v441_v52, %v385_v1 }
  0xfb   :  { %413 = vst [vmem:[%s693_s4] sm:$0xff] %v397_v4  ;;  %421 = vst [vmem:[%s693_s4 + $0x40] sm:$0xff] %v405_v5  ;;  %v398_v10 = vadd.f32 %v441_v52, %v375_v6  ;;  %v406_v11 = vadd.f32 %v441_v52, %v383_v7 }
  0xfc   :  { %416 = vst [vmem:[%s693_s4 + $0x18] sm:$0xff] %v400_v8  ;;  %424 = vst [vmem:[%s693_s4 + $0x58] sm:$0xff] %v408_v9 }
  0xfd   :  { %414 = vst [vmem:[%s693_s4 + $0x8] sm:$0xff] %v398_v10  ;;  %422 = vst [vmem:[%s693_s4 + $0x48] sm:$0xff] %v406_v11  ;;  %v480_v14 = vpop.f32.mrb[4].mxu0  ;;  %v488_v15 = vpop.f32.mrb[4].mxu1 }
  0xfe   :  { %v380_v16 = vmul.f32 %v480_v14, %v327_v44  ;;  %v388_v17 = vmul.f32 %v488_v15, %v367_v13  ;;  %v180_v18 = vpop.f32.mrb[5].mxu0  ;;  %v212_v19 = vpop.f32.mrb[5].mxu1 }
  0xff   :  { %v378_v20 = vmul.f32 %v317_v42, %v180_v18  ;;  %v386_v21 = vmul.f32 %v357_v50, %v212_v19  ;;  %v481_v22 = vpop.f32.mrb[6].mxu0  ;;  %v489_v23 = vpop.f32.mrb[6].mxu1 }
 0x100   :  { %v403_v24 = vadd.f32 %v441_v52, %v380_v16  ;;  %v411_v25 = vadd.f32 %v441_v52, %v388_v17  ;;  %v381_v26 = vmul.f32 %v481_v22, %v332_v43  ;;  %v389_v27 = vmul.f32 %v489_v23, %v372_v12  ;;  %v183_v28 = vpop.f32.mrb[7].mxu0  ;;  %v215_v29 = vpop.f32.mrb[7].mxu1 }
 0x101   :  { %v401_v30 = vadd.f32 %v441_v52, %v378_v20  ;;  %v409_v31 = vadd.f32 %v441_v52, %v386_v21  ;;  %v379_v32 = vmul.f32 %v635_v41, %v183_v28  ;;  %v387_v33 = vmul.f32 %v362_v49, %v215_v29 }
 0x102   :  { %419 = vst [vmem:[%s693_s4 + $0x30] sm:$0xff] %v403_v24  ;;  %427 = vst [vmem:[%s693_s4 + $0x70] sm:$0xff] %v411_v25  ;;  %v404_v34 = vadd.f32 %v441_v52, %v381_v26  ;;  %v412_v35 = vadd.f32 %v441_v52, %v389_v27 }
 0x103   :  { %417 = vst [vmem:[%s693_s4 + $0x20] sm:$0xff] %v401_v30  ;;  %425 = vst [vmem:[%s693_s4 + $0x60] sm:$0xff] %v409_v31  ;;  %v402_v36 = vadd.f32 %v441_v52, %v379_v32  ;;  %v410_v37 = vadd.f32 %v441_v52, %v387_v33 }
 0x104   :  { %420 = vst [vmem:[%s693_s4 + $0x38] sm:$0xff] %v404_v34  ;;  %428 = vst [vmem:[%s693_s4 + $0x78] sm:$0xff] %v412_v35 }
 0x105   :  { %418 = vst [vmem:[%s693_s4 + $0x28] sm:$0xff] %v402_v36  ;;  %426 = vst [vmem:[%s693_s4 + $0x68] sm:$0xff] %v410_v37 }

</bundles_post_ra>
